<compile_context>
chip_gen: v7x
topology: tpu7x:2x2x1
jax: 0.10.0
libtpu: 0.0.40
codegen_flags: <defaults>
</compile_context>

<pallas_src>
import jax
import jax.numpy as jnp
from jax.experimental import pallas as pl
from jax.experimental.pallas import tpu as pltpu

BN_EPS = 1e-5


def _stats_kernel(x_ref, w2_ref, sum_ref, sq_ref, shift_ref):
    """Pass 1: accumulate BN statistics of z = conv2(x) (without its bias)."""
    x = x_ref[0]                                            # (C, T)
    z = jnp.sum(x * w2_ref[0], axis=0, keepdims=True)       # (1, T)  VPU mul + sublane reduce

    first = jnp.logical_and(pl.program_id(0) == 0, pl.program_id(1) == 0)

    @pl.when(first)
    def _():
        # Mean of the first tile as a shift so the second-moment accumulator is
        # mean-centred (avoids E[z^2] - E[z]^2 catastrophic cancellation).
        shift_ref[...] = jnp.mean(z, axis=1, keepdims=True)
        sum_ref[...] = jnp.zeros_like(sum_ref)
        sq_ref[...] = jnp.zeros_like(sq_ref)

    zc = z - shift_ref[...]                                  # (1, T)
    sum_ref[...] += z                                        # exact sum (for the mean)
    sq_ref[...] += zc * zc                                   # shifted second moment


def _apply_kernel(s_ref, x_ref, w2_ref, o_ref):
    """Pass 2: out = w1*x + b1 + relu(c1*z + c0), z = sum_c w2[c]*x[c,:]."""
    x = x_ref[0]                                             # (C, T)
    z = jnp.sum(x * w2_ref[0], axis=0, keepdims=True)        # (1, T)
    w1 = s_ref[0]
    b1 = s_ref[1]
    c1 = s_ref[2]                                            # gamma * rsqrt(var+eps)
    c0 = s_ref[3]                                            # beta - c1 * mean_z
    bn_relu = jnp.maximum(c1 * z + c0, 0.0)                  # (1, T)
    o_ref[0] = x * w1 + b1 + bn_relu                         # (1,T) broadcasts over C


def _pick_tile(hw, max_tile):
    """Largest multiple of 128 dividing hw (<= max_tile); else the full extent."""
    if hw % 128 != 0:
        return hw  # block == full array dim: always layout-legal (small/odd shapes)
    best = 128
    for k in range(1, hw // 128 + 1):
        cand = 128 * k
        if cand > max_tile:
            break
        if hw % cand == 0:
            best = cand
    return best


def fused_forward(x_nchw, w1, b1, w2, b2, gamma, beta, *, max_tile=8192):
    """x_nchw: (N, C, H, W) float32.  Returns (N, C, H, W) float32."""
    del b2  # conv2's bias cancels inside training-mode BatchNorm.
    n, c, h, w = x_nchw.shape
    hw = h * w
    x3 = x_nchw.reshape(n, c, hw)                     # free view, NCHW-native
    w2_col = w2.reshape(1, c, 1).astype(jnp.float32)

    t = _pick_tile(hw, max_tile)
    n_t = hw // t
    grid = (n, n_t)

    x_spec = pl.BlockSpec((1, c, t), lambda i, j: (i, 0, j))
    w2_spec = pl.BlockSpec((1, c, 1), lambda i, j: (0, 0, 0))

    # ---- pass 1: global BatchNorm statistics (cross-tile accumulation) ----
    acc_spec = pl.BlockSpec((1, t), lambda i, j: (0, 0))     # resident accumulators
    shift_spec = pl.BlockSpec((1, 1), lambda i, j: (0, 0))
    acc_sum, acc_sq, shift = pl.pallas_call(
        _stats_kernel,
        grid=grid,
        in_specs=[x_spec, w2_spec],
        out_specs=[acc_spec, acc_spec, shift_spec],
        out_shape=[jax.ShapeDtypeStruct((1, t), jnp.float32),
                   jax.ShapeDtypeStruct((1, t), jnp.float32),
                   jax.ShapeDtypeStruct((1, 1), jnp.float32)],
        compiler_params=pltpu.CompilerParams(
            dimension_semantics=("arbitrary", "arbitrary")),
    )(x3, w2_col)

    cnt = float(n * hw)
    mean_z = jnp.sum(acc_sum) / cnt
    sh = shift[0, 0]
    var = jnp.maximum(jnp.sum(acc_sq) / cnt - (mean_z - sh) ** 2, 0.0)

    inv = gamma[0] * jax.lax.rsqrt(var + BN_EPS)
    c1 = inv
    c0 = beta[0] - inv * mean_z                              # folded BN shift
    scalars = jnp.stack([w1[0], b1[0], c1, c0]).astype(jnp.float32)

    # ---- pass 2: fused conv1 + conv2 + BN + ReLU + add, lane-dense output ----
    out3 = pl.pallas_call(
        _apply_kernel,
        grid=grid,
        in_specs=[pl.BlockSpec(memory_space=pltpu.MemorySpace.SMEM),
                  x_spec, w2_spec],
        out_specs=x_spec,
        out_shape=jax.ShapeDtypeStruct((n, c, hw), jnp.float32),
        compiler_params=pltpu.CompilerParams(
            dimension_semantics=("parallel", "parallel")),
    )(scalars, x3, w2_col)

    return out3.reshape(n, c, h, w)


def reference_forward(x_nchw, w1, b1, w2, b2, gamma, beta):
    """Plain-JAX reference with identical semantics."""
    x1 = x_nchw * w1[0] + b1[0]
    y2 = jnp.einsum('nchw,c->nhw', x_nchw, w2)[:, None, :, :] + b2[0]
    mean = jnp.mean(y2)
    var = jnp.mean((y2 - mean) ** 2)
    xhat = (y2 - mean) / jnp.sqrt(var + BN_EPS)
    x3 = jnp.maximum(xhat * gamma[0] + beta[0], 0.0)
    return x1 + x3


if __name__ == "__main__":
    key = jax.random.PRNGKey(0)
    k_x, k_w1, k_b1, k_w2, k_b2, k_x2 = jax.random.split(key, 6)

    C = 16
    w1 = jax.random.normal(k_w1, (1,), dtype=jnp.float32) * 0.5    # conv1 weight (1,1,1,1)
    b1 = jax.random.normal(k_b1, (1,), dtype=jnp.float32) * 0.1    # conv1 bias
    w2 = jax.random.normal(k_w2, (C,), dtype=jnp.float32) * 0.25   # conv2 weight (1,16,1,1)
    b2 = jax.random.normal(k_b2, (1,), dtype=jnp.float32) * 0.1    # conv2 bias
    gamma = jnp.ones((1,), dtype=jnp.float32)                      # bn weight
    beta = jnp.zeros((1,), dtype=jnp.float32)                      # bn bias

    # Case 1: the module's original shape (single-tile path).
    x_a = jax.random.normal(k_x, (1, C, 2, 2), dtype=jnp.float32)
    out_a = jax.block_until_ready(fused_forward(x_a, w1, b1, w2, b2, gamma, beta))
    ref_a = reference_forward(x_a, w1, b1, w2, b2, gamma, beta)
    assert out_a.shape == x_a.shape, out_a.shape
    assert jnp.allclose(out_a, ref_a, rtol=1e-4, atol=1e-4), (
        f"max abs err = {float(jnp.max(jnp.abs(out_a - ref_a)))}")

    # Case 2: larger, non-zero-mean input exercising the multi-tile grid and
    # the cross-tile (mean-shifted) BN statistics accumulation.
    x_b = jax.random.normal(k_x2, (2, C, 16, 16), dtype=jnp.float32) + 3.0
    out_b = jax.block_until_ready(
        fused_forward(x_b, w1, b1, w2, b2, gamma, beta, max_tile=128))
    ref_b = reference_forward(x_b, w1, b1, w2, b2, gamma, beta)
    assert out_b.shape == x_b.shape, out_b.shape
    assert jnp.allclose(out_b, ref_b, rtol=1e-4, atol=1e-4), (
        f"max abs err = {float(jnp.max(jnp.abs(out_b - ref_b)))}")

    print("KERNEL_OK")
</pallas_src>

<mosaic_0001>
module attributes {stable_mosaic.version = 11 : i64} {
  func.func @_stats_kernel(%arg0: i32, %arg1: i32, %arg2: memref<1x16x4xf32, #tpu.memory_space<vmem>>, %arg3: memref<1x16x1xf32, #tpu.memory_space<vmem>>, %arg4: memref<1x4xf32, #tpu.memory_space<vmem>>, %arg5: memref<1x4xf32, #tpu.memory_space<vmem>>, %arg6: memref<1x1xf32, #tpu.memory_space<vmem>>) attributes {dimension_semantics = [#tpu.dimension_semantics<arbitrary>, #tpu.dimension_semantics<arbitrary>], iteration_bounds = array<i64: 1, 1>, scalar_prefetch = 0 : i64, scratch_operands = 0 : i64, tpu.core_type = #tpu.core_type<tc>, window_params = [{transform_indices = @transform_0, window_bounds = array<i64: 1, 16, 4>}, {pipeline_mode = #tpu.pipeline_mode<synchronous>, transform_indices = @transform_1, window_bounds = array<i64: 1, 16, 1>}, {pipeline_mode = #tpu.pipeline_mode<synchronous>, transform_indices = @transform_2, window_bounds = array<i64: 1, 4>}, {pipeline_mode = #tpu.pipeline_mode<synchronous>, transform_indices = @transform_3, window_bounds = array<i64: 1, 4>}, {pipeline_mode = #tpu.pipeline_mode<synchronous>, transform_indices = @transform_4, window_bounds = array<i64: 1, 1>}]} {
    %c0 = arith.constant 0 : index
    %c0_0 = arith.constant 0 : index
    %c0_1 = arith.constant 0 : index
    %0 = vector.load %arg2[%c0, %c0_0, %c0_1] : memref<1x16x4xf32, #tpu.memory_space<vmem>>, vector<1x16x4xf32>
    %1 = vector.shape_cast %0 : vector<1x16x4xf32> to vector<16x4xf32>
    %c0_2 = arith.constant 0 : index
    %c0_3 = arith.constant 0 : index
    %c0_4 = arith.constant 0 : index
    %2 = vector.load %arg3[%c0_2, %c0_3, %c0_4] : memref<1x16x1xf32, #tpu.memory_space<vmem>>, vector<1x16x1xf32>
    %3 = vector.shape_cast %2 : vector<1x16x1xf32> to vector<16x1xf32>
    %4 = vector.broadcast %3 : vector<16x1xf32> to vector<16x4xf32>
    %5 = arith.mulf %1, %4 : vector<16x4xf32>
    %cst = arith.constant dense<0.000000e+00> : vector<4xf32>
    %6 = vector.multi_reduction <add>, %5, %cst [0] : vector<16x4xf32> to vector<4xf32>
    %7 = vector.shape_cast %6 : vector<4xf32> to vector<1x4xf32>
    %c0_i32 = arith.constant 0 : i32
    %8 = arith.cmpi eq, %arg0, %c0_i32 : i32
    %c0_i32_5 = arith.constant 0 : i32
    %9 = arith.cmpi eq, %arg1, %c0_i32_5 : i32
    %10 = arith.andi %8, %9 : i1
    %11 = arith.extui %10 : i1 to i32
    %c0_i32_6 = arith.constant 0 : i32
    %12 = arith.cmpi ne, %11, %c0_i32_6 : i32
    scf.if %12 {
      %cst_17 = arith.constant dense<0.000000e+00> : vector<1xf32>
      %23 = vector.multi_reduction <add>, %7, %cst_17 [1] : vector<1x4xf32> to vector<1xf32>
      %24 = vector.shape_cast %23 : vector<1xf32> to vector<1x1xf32>
      %cst_18 = arith.constant 4.000000e+00 : f32
      %25 = vector.broadcast %cst_18 : f32 to vector<1x1xf32>
      %26 = arith.divf %24, %25 : vector<1x1xf32>
      %c0_19 = arith.constant 0 : index
      %c0_20 = arith.constant 0 : index
      %27 = vector.load %arg6[%c0_19, %c0_20] : memref<1x1xf32, #tpu.memory_space<vmem>>, vector<1x1xf32>
      tpu.vector_store %arg6[%c0_19, %c0_20], %26 {strides = array<i32>} : memref<1x1xf32, #tpu.memory_space<vmem>>, vector<1x1xf32>,
      %cst_21 = arith.constant 0.000000e+00 : f32
      %28 = vector.broadcast %cst_21 : f32 to vector<1x4xf32>
      %c0_22 = arith.constant 0 : index
      %c0_23 = arith.constant 0 : index
      %29 = vector.load %arg4[%c0_22, %c0_23] : memref<1x4xf32, #tpu.memory_space<vmem>>, vector<1x4xf32>
      tpu.vector_store %arg4[%c0_22, %c0_23], %28 {strides = array<i32>} : memref<1x4xf32, #tpu.memory_space<vmem>>, vector<1x4xf32>,
      %cst_24 = arith.constant 0.000000e+00 : f32
      %30 = vector.broadcast %cst_24 : f32 to vector<1x4xf32>
      %c0_25 = arith.constant 0 : index
      %c0_26 = arith.constant 0 : index
      %31 = vector.load %arg5[%c0_25, %c0_26] : memref<1x4xf32, #tpu.memory_space<vmem>>, vector<1x4xf32>
      tpu.vector_store %arg5[%c0_25, %c0_26], %30 {strides = array<i32>} : memref<1x4xf32, #tpu.memory_space<vmem>>, vector<1x4xf32>,
    } else {
    }
    %c0_7 = arith.constant 0 : index
    %c0_8 = arith.constant 0 : index
    %13 = vector.load %arg6[%c0_7, %c0_8] : memref<1x1xf32, #tpu.memory_space<vmem>>, vector<1x1xf32>
    %14 = vector.broadcast %13 : vector<1x1xf32> to vector<1x4xf32>
    %15 = arith.subf %7, %14 : vector<1x4xf32>
    %c0_9 = arith.constant 0 : index
    %c0_10 = arith.constant 0 : index
    %16 = vector.load %arg4[%c0_9, %c0_10] : memref<1x4xf32, #tpu.memory_space<vmem>>, vector<1x4xf32>
    %17 = arith.addf %16, %7 : vector<1x4xf32>
    %c0_11 = arith.constant 0 : index
    %c0_12 = arith.constant 0 : index
    %18 = vector.load %arg4[%c0_11, %c0_12] : memref<1x4xf32, #tpu.memory_space<vmem>>, vector<1x4xf32>
    tpu.vector_store %arg4[%c0_11, %c0_12], %17 {strides = array<i32>} : memref<1x4xf32, #tpu.memory_space<vmem>>, vector<1x4xf32>,
    %c0_13 = arith.constant 0 : index
    %c0_14 = arith.constant 0 : index
    %19 = vector.load %arg5[%c0_13, %c0_14] : memref<1x4xf32, #tpu.memory_space<vmem>>, vector<1x4xf32>
    %20 = arith.mulf %15, %15 : vector<1x4xf32>
    %21 = arith.addf %19, %20 : vector<1x4xf32>
    %c0_15 = arith.constant 0 : index
    %c0_16 = arith.constant 0 : index
    %22 = vector.load %arg5[%c0_15, %c0_16] : memref<1x4xf32, #tpu.memory_space<vmem>>, vector<1x4xf32>
    tpu.vector_store %arg5[%c0_15, %c0_16], %21 {strides = array<i32>} : memref<1x4xf32, #tpu.memory_space<vmem>>, vector<1x4xf32>,
    return
  }
  func.func @transform_0(%arg0: i32, %arg1: i32) -> (i32, i32, i32) {
    %c0_i32 = arith.constant 0 : i32
    %c0_i32_0 = arith.constant 0 : i32
    return %arg0, %c0_i32, %arg1 : i32, i32, i32
  }
  func.func @transform_1(%arg0: i32, %arg1: i32) -> (i32, i32, i32) {
    %c0_i32 = arith.constant 0 : i32
    %c0_i32_0 = arith.constant 0 : i32
    %c0_i32_1 = arith.constant 0 : i32
    %c0_i32_2 = arith.constant 0 : i32
    return %c0_i32, %c0_i32_0, %c0_i32_1 : i32, i32, i32
  }
  func.func @transform_2(%arg0: i32, %arg1: i32) -> (i32, i32) {
    %c0_i32 = arith.constant 0 : i32
    %c0_i32_0 = arith.constant 0 : i32
    %c0_i32_1 = arith.constant 0 : i32
    return %c0_i32, %c0_i32_0 : i32, i32
  }
  func.func @transform_3(%arg0: i32, %arg1: i32) -> (i32, i32) {
    %c0_i32 = arith.constant 0 : i32
    %c0_i32_0 = arith.constant 0 : i32
    %c0_i32_1 = arith.constant 0 : i32
    return %c0_i32, %c0_i32_0 : i32, i32
  }
  func.func @transform_4(%arg0: i32, %arg1: i32) -> (i32, i32) {
    %c0_i32 = arith.constant 0 : i32
    %c0_i32_0 = arith.constant 0 : i32
    %c0_i32_1 = arith.constant 0 : i32
    return %c0_i32, %c0_i32_0 : i32, i32
  }
}

</mosaic_0001>

<bundles_post_ra>
// kernel: tpu_custom_call.1
= control target key start
LH: loop header
LB: loop body
LE: loop exit
PB: predicated region body
PF: predicated region fallthrough
CT: control target
= control target key end

     0   :  { %10 = vsyncpa [#allocation3], 0  ;;  %s285_s0 = inlined_call_operand.vmem [shape: f32[1,16,4], index: 0, kind: input, shape index: {}]   ;;  %s286_s1 = inlined_call_operand.vmem [shape: f32[1,16,1], index: 1, kind: input, shape index: {}]   ;;  %s287_s2 = inlined_call_operand.hbm [shape: f32[1,4], index: 2, kind: output, shape index: {0}]   ;;  %s288_s3 = inlined_call_operand.hbm [shape: f32[1,4], index: 3, kind: output, shape index: {1}]   ;;  %s289_s4 = inlined_call_operand.hbm [shape: f32[1,1], index: 4, kind: output, shape index: {2}]  }
   0x1   :  { %v18_v0 = vld [vmem:[%s286_s1] sm:$0xff] }
   0x2   :  { %11 = vsyncpa [#allocation5], 0  ;;  %v195_v1 = vmov 0   ;;  %v19_v2 = vld [vmem:[%s286_s1 + $0x8] sm:$0xff]  ;;  %vm55_vm0 = vcmask 24576   ;;  %v196_v3 = vmov 0.0  }
   0x3   :  { %123 = vset.pattern.permute.xlu0 %v195_v1  ;;  %124 = vset.pattern.permute.xlu1 %v195_v1  ;;  %57 = vst.msk [vmem:[#allocation4] sm:$0x1] %vm55_vm0, %v196_v3  ;;  %56 = vst.msk [vmem:[#allocation2] sm:$0x1] %vm55_vm0, %v196_v3  ;;  %v16_v5 = vld [vmem:[%s285_s0] sm:$0xff]  ;;  %v17_v6 = vld [vmem:[%s285_s0 + $0x8] sm:$0xff] }
   0x4   :  { %22 = vperm.xlu0 %123, %v18_v0   ;;  %vm32_vm1 = vcmask 31744   ;;  %vm53_vm2 = vcmask 0   ;;  %s197_s0 = smov [#allocation2]  }
   0x5   :  { %s83_s1 = sshll.u32 %s197_s0, 4  ;;  %s84_s1 = int_to_ptr.vmem [resolvable:$true] %s83_s1 }
   0x6   :  { %s125_s23 = scalar_lea.vmem %s84_s1, 16  ;;  %s129_s24 = scalar_lea.vmem %s84_s1, 32 }
   0x7   :  { %p126_p0 = scmp.ne.s32.totalorder %s84_s1, %s125_s23  ;;  %p130_p1 = scmp.lt.s32.totalorder %s84_s1, %s84_s1 }
   0x8   :  { %27 = vperm.xlu0 %123, %v19_v2   ;;  %p131_p2 = scmp.lt.s32.totalorder %s129_s24, %s125_s23 }
   0xa   :  { %v69_v18 = vld [vmem:[#allocation2] sm:$0x1]  ;;  %p132_p3 = por %p131_p2, %p130_p1 }
   0xc   :  { %p133_p4 = pnand %p132_p3, %p126_p0 }
  0x83   :  { %v23_v4 = vpop.permute.xlu0 %22 }
  0x84   :  { %v30_v7 = vmul.f32 %v23_v4, %v16_v5 }
  0x86   :  { %v33_v10 = vsel %vm32_vm1, %v30_v7, 0.0 }
  0x87   :  { %v28_v8 = vpop.permute.xlu0 %27 }
  0x88   :  { %v31_v9 = vmul.f32 %v28_v8, %v17_v6 }
  0x8a   :  { %v34_v11 = vsel %vm32_vm1, %v31_v9, 0.0 }
  0x8b   :  { %v35_v12 = vadd.f32 %v34_v11, %v33_v10 }
  0x8d   :  { %v36_v13 = vrot.slane %v35_v12, 4 }
  0x8f   :  { %v37_v14 = vadd.f32 %v36_v13, %v35_v12 }
  0x91   :  { %v38_v15 = vrot.slane %v37_v14, 2 }
  0x93   :  { %v39_v16 = vadd.f32 %v38_v15, %v37_v14 }
  0x95   :  { %v40_v17 = vrot.slane %v39_v16, 1 }
  0x97   :  { %v41_v19 = vadd.f32 %v40_v17, %v39_v16 }
  0x99   :  { %v48_v20 = vsel %vm32_vm1, %v41_v19, 0.0  ;;  %v70_v21 = vadd.f32 %v69_v18, %v41_v19 }
  0x9a   :  { %49 = vadd.xlane.f32.xlu1 %v48_v20 }
  0x9b   :  { %72 = vst.msk [vmem:[#allocation2] sm:$0x1] %vm55_vm0, %v70_v21 }
 0x127   :  { %v50_v22 = vpop.xlane.xlu1 %49 }
 0x128   :  { %v52_v23 = vmul.f32 0.25, %v50_v22 }
 0x12a   :  { %54 = vst.msk [vmem:[#allocation6] sm:$0x1] %vm53_vm2, %v52_v23 }
 0x131   :  { %v58_v24 = vld [vmem:[#allocation6] sm:$0x1] }
 0x132   :  { %61 = vperm.xlu1 %124, %v58_v24  }
 0x133   :  { %136 = shalt.err (!%p133_p4)
}
 0x134   :  { %s137_s27 = scalar_lea.hbm %s287_s2, 16 }
 0x135   :  { %p138_p5 = scmp.ne.s32.totalorder %s287_s2, %s137_s27  ;;  %p141_p6 = scmp.lt.u32.totalorder %s137_s27, %s287_s2 }
 0x137   :  { %p143_p7 = pnand %p141_p6, %p138_p5 }
 0x139   :  { %146 = shalt.err (!%p143_p7)
}
 0x13a   :  { %86 = dma.vmem_to_hbm [thread:$0]  %s84_s1, 16, %s287_s2, [#allocation3]   ;;  %v64_v25 = vlaneseq  ;;  %v73_v31 = vld [vmem:[#allocation4] sm:$0x1] }
 0x13b   :  { %s198_s8 = smov [#allocation4]   ;;  %s199_s10 = smov [#allocation6]  }
 0x13c   :  { %v65_v26 = vshrl.u32 %v64_v25, 7  ;;  %s93_s9 = sshll.u32 %s198_s8, 4  ;;  %s103_s11 = sshll.u32 %s199_s10, 4  ;;  %s94_s9 = int_to_ptr.vmem [resolvable:$true] %s93_s9  ;;  %s252_s11 = int_to_ptr.vmem [resolvable:$true] %s103_s11 }
 0x13d   :  { %s147_s12 = scalar_lea.vmem %s94_s9, 16  ;;  %s151_s2 = scalar_lea.vmem %s94_s9, 32 }
 0x13e   :  { %v66_v27 = vsub.s32 0, %v65_v26  ;;  %p148_p8 = scmp.ne.s32.totalorder %s94_s9, %s147_s12  ;;  %p152_p9 = scmp.lt.s32.totalorder %s94_s9, %s94_s9 }
 0x13f   :  { %p153_p10 = scmp.lt.s32.totalorder %s151_s2, %s147_s12 }
 0x141   :  { %p154_p11 = por %p153_p10, %p152_p9 }
 0x143   :  { %p155_p12 = pnand %p154_p11, %p148_p8 }
 0x1b1   :  { %v62_v28 = vpop.permute.xlu1 %61 }
 0x1b2   :  { %v67_v29 = vrot.slane %v62_v28, %v66_v27 }
 0x1b4   :  { %v68_v30 = vsub.f32 %v41_v19, %v67_v29 }
 0x1b6   :  { %v74_v32 = vmul.f32 %v68_v30, %v68_v30 }
 0x1b8   :  { %v75_v33 = vadd.f32 %v74_v32, %v73_v31 }
 0x1ba   :  { %76 = vst.msk [vmem:[#allocation4] sm:$0x1] %vm55_vm0, %v75_v33 }
 0x1bb   :  { %158 = shalt.err (!%p155_p12)
}
 0x1bc   :  { %s159_s15 = scalar_lea.hbm %s288_s3, 16 }
 0x1bd   :  { %p160_p13 = scmp.ne.s32.totalorder %s288_s3, %s159_s15  ;;  %p163_p0 = scmp.lt.u32.totalorder %s159_s15, %s288_s3 }
 0x1bf   :  { %p165_p1 = pnand %p163_p0, %p160_p13 }
 0x1c1   :  { %168 = shalt.err (!%p165_p1)
}
 0x1c2   :  { %96 = dma.vmem_to_hbm [thread:$0]  %s94_s9, 16, %s288_s3, [#allocation5]  }
 0x1c3   :  { %s169_s22 = scalar_lea.vmem %s252_s11, 16  ;;  %s173_s0 = scalar_lea.vmem %s252_s11, 32 }
 0x1c4   :  { %p170_p2 = scmp.ne.s32.totalorder %s252_s11, %s169_s22  ;;  %p174_p3 = scmp.lt.s32.totalorder %s252_s11, %s252_s11 }
 0x1c5   :  { %p175_p4 = scmp.lt.s32.totalorder %s173_s0, %s169_s22 }
 0x1c7   :  { %p176_p5 = por %p175_p4, %p174_p3 }
 0x1c9   :  { %p177_p6 = pnand %p176_p5, %p170_p2 }
 0x1cb   :  { %180 = shalt.err (!%p177_p6)
}
 0x1cc   :  { %s181_s24 = scalar_lea.hbm %s289_s4, 16 }
 0x1cd   :  { %p182_p7 = scmp.ne.s32.totalorder %s289_s4, %s181_s24  ;;  %p185_p8 = scmp.lt.u32.totalorder %s181_s24, %s289_s4 }
 0x1cf   :  { %p187_p9 = pnand %p185_p8, %p182_p7 }
 0x1d1   :  { %190 = shalt.err (!%p187_p9)
}
 0x1d2   :  { %106 = dma.vmem_to_hbm [thread:$0]  %s252_s11, 16, %s289_s4, [#allocation5]  }
 0x1d3   :  { %191 = dma.done.wait [#allocation3], 16  }
 0x1d4   :  { %192 = vsyncadd [#allocation3], 4294967280 }
 0x1d5   :  { %193 = dma.done.wait [#allocation5], 32  }
 0x1d6   :  { %194 = vsyncadd [#allocation5], 4294967264 }
 0x1d7   :  { %116 = vsyncpa [#allocation3], 1 }
 0x1d8   :  { %117 = vsyncpa [#allocation5], 1 }

</bundles_post_ra>
